<compile_context>
chip_gen: v7x
topology: tpu7x:2x2x1
jax: 0.10.0
libtpu: 0.0.40
codegen_flags: <defaults>
</compile_context>

<pallas_src>
import jax
import jax.numpy as jnp
from jax.experimental import pallas as pl
from jax.experimental.pallas import tpu as pltpu


def _mlp_kernel(x_ref, w1_ref, b1_ref, w2_ref, b2_ref,
                w3_ref, b3_ref, w4_ref, b4_ref, o_ref):
    # One (TM, 8) batch tile per grid step; weights are VMEM-resident bf16,
    # biases f32.  MXU matmuls take bf16 operands, accumulate in f32; the
    # VPU/EUP epilogue (bias, relu, sigmoid) runs in f32.
    x = x_ref[...].astype(jnp.bfloat16)

    h1 = jnp.dot(x, w1_ref[...], preferred_element_type=jnp.float32) + b1_ref[...]
    h1 = jnp.maximum(h1, 0.0)                       # relu1 (dropout1 = identity)

    h2 = jnp.dot(h1.astype(jnp.bfloat16), w2_ref[...],
                 preferred_element_type=jnp.float32) + b2_ref[...]
    h2 = jnp.maximum(h2, 0.0)                       # relu2 (dropout2 = identity)

    h3 = jnp.dot(h2.astype(jnp.bfloat16), w3_ref[...],
                 preferred_element_type=jnp.float32) + b3_ref[...]
    h3 = jnp.maximum(h3, 0.0)                       # relu3 (dropout3 = identity)

    logits = jnp.dot(h3.astype(jnp.bfloat16), w4_ref[...],
                     preferred_element_type=jnp.float32) + b4_ref[...]
    o_ref[...] = jax.nn.sigmoid(logits)             # sigmoid


def diabetes_model_forward(x, params, *, tm=1024):
    """x: (B, 8) float32.  params: dict of (in,out) f32 weights, (1,out) f32 biases.

    tm: batch tile (rows per grid step).  Multiple of 8; 512-2048 recommended
    for large B.  B is zero-padded up to a multiple of tm and the padded rows
    are sliced off the output.
    """
    B, F = x.shape
    assert F == 8, "DiabetesModel expects 8 input features"
    assert tm % 8 == 0, "tm must be a multiple of 8 (sublane granularity)"

    num_tiles = pl.cdiv(B, tm)
    padded_b = num_tiles * tm
    if padded_b != B:
        x = jnp.pad(x, ((0, padded_b - B), (0, 0)))

    # Cast weights to bf16 once (MXU-native); keep biases in f32 for the VPU.
    w1 = params["w1"].astype(jnp.bfloat16)
    w2 = params["w2"].astype(jnp.bfloat16)
    w3 = params["w3"].astype(jnp.bfloat16)
    w4 = params["w4"].astype(jnp.bfloat16)
    b1, b2, b3, b4 = params["b1"], params["b2"], params["b3"], params["b4"]

    def resident(arr):
        # Full-shape block, constant block index: loaded once, reused every step.
        return pl.BlockSpec(arr.shape, lambda i: (0, 0))

    flops_per_row = 2 * (8 * 128 + 128 * 64 + 64 * 32 + 32 * 1)
    weight_bytes = ((8 * 128 + 128 * 64 + 64 * 32 + 32 * 1) * 2
                    + (128 + 64 + 32 + 1) * 4)
    cost = pl.CostEstimate(
        flops=padded_b * flops_per_row,
        transcendentals=padded_b,                     # sigmoid exp per row
        bytes_accessed=padded_b * 8 * 4 + padded_b * 1 * 4 + weight_bytes,
    )

    out = pl.pallas_call(
        _mlp_kernel,
        out_shape=jax.ShapeDtypeStruct((padded_b, 1), jnp.float32),
        grid=(num_tiles,),
        in_specs=[
            pl.BlockSpec((tm, 8), lambda i: (i, 0)),   # x: streamed batch tiles
            resident(w1), resident(b1),
            resident(w2), resident(b2),
            resident(w3), resident(b3),
            resident(w4), resident(b4),
        ],
        out_specs=pl.BlockSpec((tm, 1), lambda i: (i, 0)),
        compiler_params=pltpu.CompilerParams(
            dimension_semantics=("parallel",)),        # v7x: shard batch over 2 TCs
        cost_estimate=cost,
    )(x, w1, b1, w2, b2, w3, b3, w4, b4)

    return out[:B]


def _init_linear(key, fan_in, fan_out):
    # Mimics PyTorch nn.Linear default init: U(-1/sqrt(fan_in), 1/sqrt(fan_in)).
    kw, kb = jax.random.split(key)
    bound = 1.0 / jnp.sqrt(jnp.float32(fan_in))
    w = jax.random.uniform(kw, (fan_in, fan_out), jnp.float32, -bound, bound)
    b = jax.random.uniform(kb, (1, fan_out), jnp.float32, -bound, bound)
    return w, b


def init_params(key):
    k1, k2, k3, k4 = jax.random.split(key, 4)
    w1, b1 = _init_linear(k1, 8, 128)
    w2, b2 = _init_linear(k2, 128, 64)
    w3, b3 = _init_linear(k3, 64, 32)
    w4, b4 = _init_linear(k4, 32, 1)
    return {"w1": w1, "b1": b1, "w2": w2, "b2": b2,
            "w3": w3, "b3": b3, "w4": w4, "b4": b4}


def _reference_forward(x, p):
    # Pure f32 reference (also the recommended path for tiny batches).
    h = jnp.maximum(x @ p["w1"] + p["b1"], 0.0)
    h = jnp.maximum(h @ p["w2"] + p["b2"], 0.0)
    h = jnp.maximum(h @ p["w3"] + p["b3"], 0.0)
    return jax.nn.sigmoid(h @ p["w4"] + p["b4"])


if __name__ == "__main__":
    key = jax.random.PRNGKey(0)
    kx, kp = jax.random.split(key)

    # Small test: B deliberately not a multiple of the tile to exercise the
    # padded last tile; tm=128 gives a 3-step grid (small, but pipelined).
    B = 300
    x = jax.random.normal(kx, (B, 8), jnp.float32)
    params = init_params(kp)

    out = diabetes_model_forward(x, params, tm=128)
    out = jax.block_until_ready(out)

    ref = _reference_forward(x, params)
    assert out.shape == (B, 1)
    # bf16 MXU operands with f32 accumulation vs pure-f32 reference: loose tol.
    assert jnp.allclose(out, ref, atol=2e-2, rtol=2e-2), \
        float(jnp.max(jnp.abs(out - ref)))

    print("KERNEL_OK")
</pallas_src>

<mosaic_0001>
module attributes {stable_mosaic.version = 11 : i64} {
  func.func @_mlp_kernel(%arg0: i32, %arg1: memref<128x8xf32, #tpu.memory_space<vmem>>, %arg2: memref<8x128xbf16, #tpu.memory_space<vmem>>, %arg3: memref<1x128xf32, #tpu.memory_space<vmem>>, %arg4: memref<128x64xbf16, #tpu.memory_space<vmem>>, %arg5: memref<1x64xf32, #tpu.memory_space<vmem>>, %arg6: memref<64x32xbf16, #tpu.memory_space<vmem>>, %arg7: memref<1x32xf32, #tpu.memory_space<vmem>>, %arg8: memref<32x1xbf16, #tpu.memory_space<vmem>>, %arg9: memref<1x1xf32, #tpu.memory_space<vmem>>, %arg10: memref<128x1xf32, #tpu.memory_space<vmem>>) attributes {dimension_semantics = [#tpu.dimension_semantics<parallel>], iteration_bounds = array<i64: 3>, scalar_prefetch = 0 : i64, scratch_operands = 0 : i64, tpu.core_type = #tpu.core_type<tc>, window_params = [{transform_indices = @transform_0, window_bounds = array<i64: 128, 8>}, {pipeline_mode = #tpu.pipeline_mode<synchronous>, transform_indices = @transform_1, window_bounds = array<i64: 8, 128>}, {pipeline_mode = #tpu.pipeline_mode<synchronous>, transform_indices = @transform_2, window_bounds = array<i64: 1, 128>}, {pipeline_mode = #tpu.pipeline_mode<synchronous>, transform_indices = @transform_3, window_bounds = array<i64: 128, 64>}, {pipeline_mode = #tpu.pipeline_mode<synchronous>, transform_indices = @transform_4, window_bounds = array<i64: 1, 64>}, {pipeline_mode = #tpu.pipeline_mode<synchronous>, transform_indices = @transform_5, window_bounds = array<i64: 64, 32>}, {pipeline_mode = #tpu.pipeline_mode<synchronous>, transform_indices = @transform_6, window_bounds = array<i64: 1, 32>}, {pipeline_mode = #tpu.pipeline_mode<synchronous>, transform_indices = @transform_7, window_bounds = array<i64: 32, 1>}, {pipeline_mode = #tpu.pipeline_mode<synchronous>, transform_indices = @transform_8, window_bounds = array<i64: 1, 1>}, {transform_indices = @transform_9, window_bounds = array<i64: 128, 1>}]} {
    %c0 = arith.constant 0 : index
    %c0_0 = arith.constant 0 : index
    %0 = vector.load %arg1[%c0, %c0_0] : memref<128x8xf32, #tpu.memory_space<vmem>>, vector<128x8xf32>
    %1 = arith.truncf %0 : vector<128x8xf32> to vector<128x8xbf16>
    %c0_1 = arith.constant 0 : index
    %c0_2 = arith.constant 0 : index
    %2 = vector.load %arg2[%c0_1, %c0_2] : memref<8x128xbf16, #tpu.memory_space<vmem>>, vector<8x128xbf16>
    %cst = arith.constant dense<0.000000e+00> : vector<128x128xf32>
    %3 = tpu.matmul %1, %2, %cst {dimension_numbers = #tpu.dot_dimension_numbers<[1], [0], [0], [1], [0, 0, 1, 1], [], []>} : vector<128x8xbf16>, vector<8x128xbf16>, vector<128x128xf32> -> vector<128x128xf32>
    %c0_3 = arith.constant 0 : index
    %c0_4 = arith.constant 0 : index
    %4 = vector.load %arg3[%c0_3, %c0_4] : memref<1x128xf32, #tpu.memory_space<vmem>>, vector<1x128xf32>
    %5 = vector.broadcast %4 : vector<1x128xf32> to vector<128x128xf32>
    %6 = arith.addf %3, %5 : vector<128x128xf32>
    %cst_5 = arith.constant 0.000000e+00 : f32
    %7 = vector.broadcast %cst_5 : f32 to vector<128x128xf32>
    %8 = arith.maximumf %6, %7 : vector<128x128xf32>
    %9 = arith.truncf %8 : vector<128x128xf32> to vector<128x128xbf16>
    %c0_6 = arith.constant 0 : index
    %c0_7 = arith.constant 0 : index
    %10 = vector.load %arg4[%c0_6, %c0_7] : memref<128x64xbf16, #tpu.memory_space<vmem>>, vector<128x64xbf16>
    %cst_8 = arith.constant dense<0.000000e+00> : vector<128x64xf32>
    %11 = tpu.matmul %9, %10, %cst_8 {dimension_numbers = #tpu.dot_dimension_numbers<[1], [0], [0], [1], [0, 0, 1, 1], [], []>} : vector<128x128xbf16>, vector<128x64xbf16>, vector<128x64xf32> -> vector<128x64xf32>
    %c0_9 = arith.constant 0 : index
    %c0_10 = arith.constant 0 : index
    %12 = vector.load %arg5[%c0_9, %c0_10] : memref<1x64xf32, #tpu.memory_space<vmem>>, vector<1x64xf32>
    %13 = vector.broadcast %12 : vector<1x64xf32> to vector<128x64xf32>
    %14 = arith.addf %11, %13 : vector<128x64xf32>
    %cst_11 = arith.constant 0.000000e+00 : f32
    %15 = vector.broadcast %cst_11 : f32 to vector<128x64xf32>
    %16 = arith.maximumf %14, %15 : vector<128x64xf32>
    %17 = arith.truncf %16 : vector<128x64xf32> to vector<128x64xbf16>
    %c0_12 = arith.constant 0 : index
    %c0_13 = arith.constant 0 : index
    %18 = vector.load %arg6[%c0_12, %c0_13] : memref<64x32xbf16, #tpu.memory_space<vmem>>, vector<64x32xbf16>
    %cst_14 = arith.constant dense<0.000000e+00> : vector<128x32xf32>
    %19 = tpu.matmul %17, %18, %cst_14 {dimension_numbers = #tpu.dot_dimension_numbers<[1], [0], [0], [1], [0, 0, 1, 1], [], []>} : vector<128x64xbf16>, vector<64x32xbf16>, vector<128x32xf32> -> vector<128x32xf32>
    %c0_15 = arith.constant 0 : index
    %c0_16 = arith.constant 0 : index
    %20 = vector.load %arg7[%c0_15, %c0_16] : memref<1x32xf32, #tpu.memory_space<vmem>>, vector<1x32xf32>
    %21 = vector.broadcast %20 : vector<1x32xf32> to vector<128x32xf32>
    %22 = arith.addf %19, %21 : vector<128x32xf32>
    %cst_17 = arith.constant 0.000000e+00 : f32
    %23 = vector.broadcast %cst_17 : f32 to vector<128x32xf32>
    %24 = arith.maximumf %22, %23 : vector<128x32xf32>
    %25 = arith.truncf %24 : vector<128x32xf32> to vector<128x32xbf16>
    %c0_18 = arith.constant 0 : index
    %c0_19 = arith.constant 0 : index
    %26 = vector.load %arg8[%c0_18, %c0_19] : memref<32x1xbf16, #tpu.memory_space<vmem>>, vector<32x1xbf16>
    %cst_20 = arith.constant dense<0.000000e+00> : vector<128x1xf32>
    %27 = tpu.matmul %25, %26, %cst_20 {dimension_numbers = #tpu.dot_dimension_numbers<[1], [0], [0], [1], [0, 0, 1, 1], [], []>} : vector<128x32xbf16>, vector<32x1xbf16>, vector<128x1xf32> -> vector<128x1xf32>
    %c0_21 = arith.constant 0 : index
    %c0_22 = arith.constant 0 : index
    %28 = vector.load %arg9[%c0_21, %c0_22] : memref<1x1xf32, #tpu.memory_space<vmem>>, vector<1x1xf32>
    %29 = vector.broadcast %28 : vector<1x1xf32> to vector<128x1xf32>
    %30 = arith.addf %27, %29 : vector<128x1xf32>
    %31 = arith.negf %30 : vector<128x1xf32>
    %32 = math.exp %31 : vector<128x1xf32>
    %cst_23 = arith.constant 1.000000e+00 : f32
    %33 = vector.broadcast %cst_23 : f32 to vector<128x1xf32>
    %34 = arith.addf %33, %32 : vector<128x1xf32>
    %35 = arith.divf %33, %34 : vector<128x1xf32>
    %c0_24 = arith.constant 0 : index
    %c0_25 = arith.constant 0 : index
    %36 = vector.load %arg10[%c0_24, %c0_25] : memref<128x1xf32, #tpu.memory_space<vmem>>, vector<128x1xf32>
    tpu.vector_store %arg10[%c0_24, %c0_25], %35 {strides = array<i32>} : memref<128x1xf32, #tpu.memory_space<vmem>>, vector<128x1xf32>,
    return
  }
  func.func @transform_0(%arg0: i32) -> (i32, i32) {
    %c0_i32 = arith.constant 0 : i32
    %c0_i32_0 = arith.constant 0 : i32
    return %arg0, %c0_i32 : i32, i32
  }
  func.func @transform_1(%arg0: i32) -> (i32, i32) {
    %c0_i32 = arith.constant 0 : i32
    %c0_i32_0 = arith.constant 0 : i32
    %c0_i32_1 = arith.constant 0 : i32
    return %c0_i32, %c0_i32_0 : i32, i32
  }
  func.func @transform_2(%arg0: i32) -> (i32, i32) {
    %c0_i32 = arith.constant 0 : i32
    %c0_i32_0 = arith.constant 0 : i32
    %c0_i32_1 = arith.constant 0 : i32
    return %c0_i32, %c0_i32_0 : i32, i32
  }
  func.func @transform_3(%arg0: i32) -> (i32, i32) {
    %c0_i32 = arith.constant 0 : i32
    %c0_i32_0 = arith.constant 0 : i32
    %c0_i32_1 = arith.constant 0 : i32
    return %c0_i32, %c0_i32_0 : i32, i32
  }
  func.func @transform_4(%arg0: i32) -> (i32, i32) {
    %c0_i32 = arith.constant 0 : i32
    %c0_i32_0 = arith.constant 0 : i32
    %c0_i32_1 = arith.constant 0 : i32
    return %c0_i32, %c0_i32_0 : i32, i32
  }
  func.func @transform_5(%arg0: i32) -> (i32, i32) {
    %c0_i32 = arith.constant 0 : i32
    %c0_i32_0 = arith.constant 0 : i32
    %c0_i32_1 = arith.constant 0 : i32
    return %c0_i32, %c0_i32_0 : i32, i32
  }
  func.func @transform_6(%arg0: i32) -> (i32, i32) {
    %c0_i32 = arith.constant 0 : i32
    %c0_i32_0 = arith.constant 0 : i32
    %c0_i32_1 = arith.constant 0 : i32
    return %c0_i32, %c0_i32_0 : i32, i32
  }
  func.func @transform_7(%arg0: i32) -> (i32, i32) {
    %c0_i32 = arith.constant 0 : i32
    %c0_i32_0 = arith.constant 0 : i32
    %c0_i32_1 = arith.constant 0 : i32
    return %c0_i32, %c0_i32_0 : i32, i32
  }
  func.func @transform_8(%arg0: i32) -> (i32, i32) {
    %c0_i32 = arith.constant 0 : i32
    %c0_i32_0 = arith.constant 0 : i32
    %c0_i32_1 = arith.constant 0 : i32
    return %c0_i32, %c0_i32_0 : i32, i32
  }
  func.func @transform_9(%arg0: i32) -> (i32, i32) {
    %c0_i32 = arith.constant 0 : i32
    %c0_i32_0 = arith.constant 0 : i32
    return %arg0, %c0_i32 : i32, i32
  }
}

</mosaic_0001>

<bundles_post_ra>
// kernel: tpu_custom_call.1
= control target key start
LH: loop header
LB: loop body
LE: loop exit
PB: predicated region body
PF: predicated region fallthrough
CT: control target
= control target key end

     0   :  { %s1574_s11 = smov 0   ;;  %s1746_s0 = inlined_call_operand.vmem [shape: f32[384,8], index: 0, kind: input, shape index: {}]   ;;  %s1747_s1 = inlined_call_operand.vmem [shape: bf16[8,128], index: 1, kind: input, shape index: {}]   ;;  %s1748_s2 = inlined_call_operand.vmem [shape: f32[1,128], index: 2, kind: input, shape index: {}]   ;;  %s1749_s3 = inlined_call_operand.vmem [shape: bf16[128,64], index: 3, kind: input, shape index: {}]   ;;  %s1750_s4 = inlined_call_operand.vmem [shape: f32[1,64], index: 4, kind: input, shape index: {}]   ;;  %s1751_s5 = inlined_call_operand.vmem [shape: bf16[64,32], index: 5, kind: input, shape index: {}]   ;;  %s1752_s6 = inlined_call_operand.vmem [shape: f32[1,32], index: 6, kind: input, shape index: {}]   ;;  %s1753_s7 = inlined_call_operand.vmem [shape: bf16[32,1], index: 7, kind: input, shape index: {}]   ;;  %s1754_s8 = inlined_call_operand.<no memory space> [shape: f32[1,1], index: 8, kind: input, shape index: {}]   ;;  %s1755_s9 = inlined_call_operand.vmem [shape: f32[384,1], index: 9, kind: output, shape index: {}]  }
   0x1   :  { %v14_v0 = vstv %s1754_s8 }
   0x2   :  { %15 = vst [vmem:[#allocation2] sm:$0x1] %v14_v0 }
   0x3 LB: > { %s1212_s12 = sadd.s32 4294967295, %s1519_s11   ;;  %p1216_p0 = scmp.ge.s32.totalorder %s1519_s11, 1  ;;  %s1519_s11 = sphi %s1574_s11, %s21_s11  }
   0x4   : > { %p290_p1 = scmp.lt.s32.totalorder %s1519_s11, 4 }
   0x6   : > { %p291_p2 = pnand %p1216_p0, %p290_p1 }
   0x7   : > { %v363_v1 = vld [vmem:[%s1747_s1] sm:$0xf] (!%p291_p2)  ;;  %vm396_vm0 = vcmask (!%p291_p2), 1043456   ;;  %s1217_s8 = sshll.u32 (!%p291_p2), %s1212_s12, 4  ;;  %v1436_v4 = vld [vmem:[%s1749_s3 + $0x8] sm:$0xff] (!%p291_p2)   ;;  %v1437_v5 = vld [vmem:[%s1749_s3 + $0x10] sm:$0xff] (!%p291_p2)  }
   0x8   : > { %294 = sbr.rel (%p291_p2) target bundleno = 957 (0x3bd), region = 56  ;;  %v1435_v2 = vld [vmem:[%s1749_s3] sm:$0xff] (!%p291_p2)   ;;  %1426 = vmatprep.subr.msk.bf16.mxu0 (!%p291_p2), %vm396_vm0, %v363_v1  ;;  %v398_v3 = vsel (!%p291_p2), %vm396_vm0, %v363_v1, 0  ;;  %p327_p3 = scmp.lt.s32.totalorder (!%p291_p2), %s1217_s8, 47  ;;  %v1438_v6 = vld [vmem:[%s1749_s3 + $0x18] sm:$0xff] (!%p291_p2)   ;;  %vm371_vm1 = vcmask (!%p291_p2), 64512  }
   0x9   : > { %1329 = vmatpush3.bf16.msra.mxu0 (!%p291_p2), %v398_v3  ;;  %1346 = vmatprep.subr.bf16.mxu1 (!%p291_p2), %v1435_v2  ;;  %v1439_v16 = vld [vmem:[%s1749_s3 + $0x20] sm:$0xff] (!%p291_p2)   ;;  %v1440_v21 = vld [vmem:[%s1749_s3 + $0x28] sm:$0xff] (!%p291_p2)   ;;  %v1441_v33 = vld [vmem:[%s1749_s3 + $0x30] sm:$0xff] (!%p291_p2)   ;;  %vm752_vm2 = vcmask (!%p291_p2), 523264   ;;  %vm921_vm3 = vcmask (!%p291_p2), 261120   ;;  %vm1139_vm4 = vcmask (!%p291_p2), 7168  }
   0xa   : > { %1347 = vmatpush3.bf16.msra.mxu1 (!%p291_p2), %v1435_v2  ;;  %v1442_v34 = vld [vmem:[%s1749_s3 + $0x38] sm:$0xff] (!%p291_p2)   ;;  %v1443_v35 = vld [vmem:[%s1751_s5] sm:$0xff] (!%p291_p2)   ;;  %v1444_v36 = vld [vmem:[%s1751_s5 + $0x8] sm:$0xff] (!%p291_p2)  }
   0xb   : > { %1348 = vmatprep.subr.bf16.mxu1 (!%p291_p2), %v1436_v4  ;;  %1378 = vmatprep.subr.bf16.mxu0 (!%p291_p2), %v1443_v35  ;;  %v1445_v37 = vld [vmem:[%s1751_s5 + $0x10] sm:$0xff] (!%p291_p2)   ;;  %v1221_v38 = vld [vmem:[%s1748_s2] ss:$0 sm:$0xff] (!%p291_p2) }
   0xe   : > { %1349 = vmatpush3.bf16.msra.mxu1 (!%p291_p2), %v1436_v4 }
   0xf   : > { %s1757_s8 = smov (!%p327_p3, %s1217_s8), 47  ;;  %1350 = vmatprep.subr.bf16.mxu1 %v1437_v5 }
  0x10   : > { %s1218_s21 = sshll.u32 %s1757_s8, 3 }
  0x11   : > { %s1602_s24 = scalar_lea.vmem %s1746_s0, %s1218_s21  ;;  %s1706_s16 = scalar_lea.vmem %s1755_s9, %s1218_s21 }
  0x12   : > { %v339_v7 = vld [vmem:[%s1602_s24] sm:$0xff]  ;;  %v340_v8 = vld [vmem:[%s1602_s24 + $0x8] sm:$0xff]  ;;  %v341_v9 = vld [vmem:[%s1602_s24 + $0x10] sm:$0xff]  ;;  %1351 = vmatpush3.bf16.msra.mxu1 %v1437_v5 }
  0x13   : > { %v355_v10 = vpack.c.bf16 %v340_v8, %v339_v7  ;;  %v342_v11 = vld [vmem:[%s1602_s24 + $0x18] sm:$0xff]  ;;  %v343_v12 = vld [vmem:[%s1602_s24 + $0x20] sm:$0xff]  ;;  %v344_v13 = vld [vmem:[%s1602_s24 + $0x28] sm:$0xff]  ;;  %1352 = vmatprep.subr.bf16.mxu1 %v1438_v6 }
  0x14   : > { %v356_v14 = vpack.c.bf16 %v342_v11, %v341_v9  ;;  %v357_v15 = vpack.c.bf16 %v344_v13, %v343_v12  ;;  %v345_v17 = vld [vmem:[%s1602_s24 + $0x30] sm:$0xff]  ;;  %v346_v18 = vld [vmem:[%s1602_s24 + $0x38] sm:$0xff]  ;;  %v347_v19 = vld [vmem:[%s1602_s24 + $0x40] sm:$0xff] }
  0x15   : > { %1330 = vmatprep.mubr.msk.bf16.mxu0 %vm371_vm1, %v355_v10  ;;  %v348_v20 = vld [vmem:[%s1602_s24 + $0x48] sm:$0xff]  ;;  %v358_v22 = vpack.c.bf16 %v346_v18, %v345_v17  ;;  %v349_v24 = vld [vmem:[%s1602_s24 + $0x50] sm:$0xff]  ;;  %v350_v25 = vld [vmem:[%s1602_s24 + $0x58] sm:$0xff] }
  0x16   : > { %1331 = vmatmul.mubr.msk.bf16.vlgmr.msra.gmra.mrb[0].mxu0 %vm371_vm1, %v356_v14  ;;  %1353 = vmatpush3.bf16.msra.mxu1 %v1438_v6  ;;  %v359_v23 = vpack.c.bf16 %v348_v20, %v347_v19  ;;  %v351_v26 = vld [vmem:[%s1602_s24 + $0x60] sm:$0xff]  ;;  %v352_v27 = vld [vmem:[%s1602_s24 + $0x68] sm:$0xff]  ;;  %v360_v28 = vpack.c.bf16 %v350_v25, %v349_v24  ;;  %v353_v30 = vld [vmem:[%s1602_s24 + $0x70] sm:$0xff] }
  0x17   : > { %1334 = vmatprep.mubr.msk.bf16.mxu0 %vm371_vm1, %v357_v15  ;;  %1354 = vmatprep.subr.bf16.mxu1 %v1439_v16  ;;  %v361_v29 = vpack.c.bf16 %v352_v27, %v351_v26  ;;  %v354_v31 = vld [vmem:[%s1602_s24 + $0x78] sm:$0xff] }
  0x18   : > { %v362_v32 = vpack.c.bf16 %v354_v31, %v353_v30  ;;  %1379 = vmatpush3.bf16.msra.mxu0 %v1443_v35  ;;  %v1446_v31 = vld [vmem:[%s1751_s5 + $0x18] sm:$0xff]  }
  0x19   : > { %1380 = vmatprep.subr.bf16.mxu0 %v1444_v36 }
  0x1a   : > { %1355 = vmatpush3.bf16.msra.mxu1 %v1439_v16 }
  0x1b   : > { %1356 = vmatprep.subr.bf16.mxu1 %v1440_v21 }
  0x1c   : > { %1381 = vmatpush3.bf16.msra.mxu0 %v1444_v36 }
  0x1d   : > { %1382 = vmatprep.subr.bf16.mxu0 %v1445_v37 }
  0x1e   : > { %1335 = vmatmul.mubr.msk.bf16.gmra.mrb[4].mxu0 %vm371_vm1, %v358_v22  ;;  %1357 = vmatpush3.bf16.msra.mxu1 %v1440_v21 }
  0x1f   : > { %1338 = vmatprep.mubr.msk.bf16.mxu0 %vm371_vm1, %v359_v23  ;;  %1358 = vmatprep.subr.bf16.mxu1 %v1441_v33 }
  0x20   : > { %1383 = vmatpush3.bf16.msra.mxu0 %v1445_v37 }
  0x21   : > { %1384 = vmatprep.subr.bf16.mxu0 %v1446_v31 }
  0x22   : > { %1359 = vmatpush3.bf16.msra.mxu1 %v1441_v33  ;;  %v1230_v33 = vld [vmem:[%s1750_s4] ss:$0 sm:$0xff] }
  0x23   : > { %1360 = vmatprep.subr.bf16.mxu1 %v1442_v34 }
  0x24   : > { %1385 = vmatpush3.bf16.msra.mxu0 %v1446_v31 }
  0x26   : > { %1339 = vmatmul.mubr.msk.bf16.gmra.mrb[8].mxu0 %vm371_vm1, %v360_v28  ;;  %1361 = vmatpush3.bf16.msra.mxu1 %v1442_v34 }
  0x27   : > { %1342 = vmatprep.mubr.msk.bf16.mxu0 %vm371_vm1, %v361_v29 }
  0x2e   : > { %1343 = vmatmul.mubr.msk.bf16.gmra.mrb[12].mxu0 %vm371_vm1, %v362_v32  ;;  %v1447_v32 = vld [vmem:[%s1753_s7] sm:$0xff]  }
  0x2f   : > { %1422 = vmatprep.subr.bf16.mxu1 %v1447_v32  ;;  %1402 = vmatprep.subr.bf16.mxu0 %v1447_v32 }
  0xe9   : > { %v1332_v39 = vpop.f32.mrb[0].mxu0 }
  0xea   : > { %v443_v40 = vadd.f32 %v1332_v39, %v1221_v38  ;;  %v434_v41 = vpop.f32.mrb[1].mxu0 }
  0xeb   : > { %v435_v42 = vadd.f32 %v1221_v38, %v434_v41  ;;  %v1333_v43 = vpop.f32.mrb[2].mxu0 }
  0xec   : > { %v446_v44 = vadd.f32 %v1333_v43, %v1221_v38  ;;  %v437_v45 = vpop.f32.mrb[3].mxu0  ;;  %v499_v47 = vmax.f32 %v443_v40, 0.0 }
  0xed   : > { %v438_v46 = vadd.f32 %v1221_v38, %v437_v45  ;;  %v497_v49 = vmax.f32 %v435_v42, 0.0 }
  0xee   : > { %v500_v48 = vmax.f32 %v446_v44, 0.0 }
  0xef   : > { %v498_v50 = vmax.f32 %v438_v46, 0.0 }
  0xf0   : > { %v514_v51 = vpack.c.bf16 %v500_v48, %v499_v47 }
  0xf1   : > { %v1336_v52 = vpop.f32.mrb[4].mxu0  ;;  %v513_v53 = vpack.c.bf16 %v498_v50, %v497_v49 }
  0xf2   : > { %v459_v54 = vadd.f32 %v1336_v52, %v1221_v38  ;;  %v450_v55 = vpop.f32.mrb[5].mxu0 }
  0xf3   : > { %v451_v56 = vadd.f32 %v1221_v38, %v450_v55  ;;  %v1337_v57 = vpop.f32.mrb[6].mxu0  ;;  %1362 = vmatprep.mubr.bf16.mxu1 %v513_v53 }
  0xf4   : > { %v462_v58 = vadd.f32 %v1337_v57, %v1221_v38  ;;  %v453_v59 = vpop.f32.mrb[7].mxu0  ;;  %1363 = vmatmul.mubr.bf16.vlgmr.msra.gmra.mrb[0].mxu1 %v514_v51  ;;  %v503_v61 = vmax.f32 %v459_v54, 0.0 }
  0xf5   : > { %v454_v60 = vadd.f32 %v1221_v38, %v453_v59  ;;  %v501_v63 = vmax.f32 %v451_v56, 0.0  ;;  %1424 = vmatpush3.bf16.msra.mxu1 %v1447_v32 }
  0xf6   : > { %v504_v62 = vmax.f32 %v462_v58, 0.0 }
  0xf7   : > { %v502_v0 = vmax.f32 %v454_v60, 0.0 }
  0xf8   : > { %v516_v1 = vpack.c.bf16 %v504_v62, %v503_v61 }
  0xf9   : > { %v515_v2 = vpack.c.bf16 %v502_v0, %v501_v63  ;;  %v1340_v3 = vpop.f32.mrb[8].mxu0 }
  0xfa   : > { %v475_v4 = vadd.f32 %v1340_v3, %v1221_v38  ;;  %v466_v5 = vpop.f32.mrb[9].mxu0 }
  0xfb   : > { %v467_v6 = vadd.f32 %v1221_v38, %v466_v5  ;;  %v1341_v7 = vpop.f32.mrb[10].mxu0  ;;  %1366 = vmatprep.mubr.bf16.mxu1 %v515_v2 }
  0xfc   : > { %v478_v8 = vadd.f32 %v1341_v7, %v1221_v38  ;;  %v469_v9 = vpop.f32.mrb[11].mxu0  ;;  %1367 = vmatmul.mubr.bf16.gmra.mrb[4].mxu1 %v516_v1  ;;  %v507_v11 = vmax.f32 %v475_v4, 0.0 }
  0xfd   : > { %v470_v10 = vadd.f32 %v1221_v38, %v469_v9  ;;  %v505_v13 = vmax.f32 %v467_v6, 0.0 }
  0xfe   : > { %v508_v12 = vmax.f32 %v478_v8, 0.0 }
  0xff   : > { %v506_v14 = vmax.f32 %v470_v10, 0.0 }
 0x100   : > { %v518_v15 = vpack.c.bf16 %v508_v12, %v507_v11 }
 0x101   : > { %v517_v16 = vpack.c.bf16 %v506_v14, %v505_v13  ;;  %v1344_v17 = vpop.f32.mrb[12].mxu0 }
 0x102   : > { %v491_v18 = vadd.f32 %v1344_v17, %v1221_v38  ;;  %v482_v19 = vpop.f32.mrb[13].mxu0 }
 0x103   : > { %v483_v20 = vadd.f32 %v1221_v38, %v482_v19  ;;  %v1345_v21 = vpop.f32.mrb[14].mxu0  ;;  %1370 = vmatprep.mubr.bf16.mxu1 %v517_v16 }
 0x104   : > { %v494_v22 = vadd.f32 %v1345_v21, %v1221_v38  ;;  %v485_v23 = vpop.f32.mrb[15].mxu0  ;;  %1371 = vmatmul.mubr.bf16.gmra.mrb[8].mxu1 %v518_v15  ;;  %v511_v25 = vmax.f32 %v491_v18, 0.0 }
 0x105   : > { %v486_v24 = vadd.f32 %v1221_v38, %v485_v23  ;;  %v509_v27 = vmax.f32 %v483_v20, 0.0 }
 0x106   : > { %v512_v26 = vmax.f32 %v494_v22, 0.0 }
 0x107   : > { %v510_v28 = vmax.f32 %v486_v24, 0.0 }
 0x108   : > { %v520_v29 = vpack.c.bf16 %v512_v26, %v511_v25  ;;  %v1448_v26 = vld [vmem:[%s1753_s7 + $0x8] sm:$0xff]  }
 0x109   : > { %v519_v30 = vpack.c.bf16 %v510_v28, %v509_v27  ;;  %1423 = vmatprep.subr.bf16.mxu1 %v1448_v26  ;;  %v1239_v27 = vld [vmem:[%s1752_s6] ss:$0 sm:$0xff] }
 0x10a   : > { %1425 = vmatpush3.bf16.msra.mxu1 %v1448_v26 }
 0x10b   : > { %1374 = vmatprep.mubr.bf16.mxu1 %v519_v30 }
 0x10c   : > { %1375 = vmatmul.mubr.bf16.gmra.mrb[12].mxu1 %v520_v29 }
 0x1c7   : > { %v1364_v34 = vpop.f32.mrb[0].mxu1 }
 0x1c8   : > { %v635_v35 = vadd.f32 %v1364_v34, %v1230_v33  ;;  %v626_v36 = vpop.f32.mrb[1].mxu1 }
 0x1c9   : > { %v627_v37 = vadd.f32 %v1230_v33, %v626_v36  ;;  %v1365_v38 = vpop.f32.mrb[2].mxu1 }
 0x1ca   : > { %v638_v39 = vadd.f32 %v1365_v38, %v1230_v33  ;;  %v629_v40 = vpop.f32.mrb[3].mxu1  ;;  %v691_v42 = vmax.f32 %v635_v35, 0.0 }
 0x1cb   : > { %v630_v41 = vadd.f32 %v1230_v33, %v629_v40  ;;  %v689_v44 = vmax.f32 %v627_v37, 0.0 }
 0x1cc   : > { %v692_v43 = vmax.f32 %v638_v39, 0.0 }
 0x1cd   : > { %v690_v45 = vmax.f32 %v630_v41, 0.0 }
 0x1ce   : > { %v706_v46 = vpack.c.bf16 %v692_v43, %v691_v42 }
 0x1cf   : > { %v705_v47 = vpack.c.bf16 %v690_v45, %v689_v44  ;;  %v1368_v48 = vpop.f32.mrb[4].mxu1 }
 0x1d0   : > { %v651_v49 = vadd.f32 %v1368_v48, %v1230_v33  ;;  %v642_v50 = vpop.f32.mrb[5].mxu1 }
 0x1d1   : > { %v643_v51 = vadd.f32 %v1230_v33, %v642_v50  ;;  %v1369_v52 = vpop.f32.mrb[6].mxu1  ;;  %1386 = vmatprep.mubr.msk.bf16.mxu0 %vm752_vm2, %v705_v47 }
 0x1d2   : > { %v654_v53 = vadd.f32 %v1369_v52, %v1230_v33  ;;  %v645_v54 = vpop.f32.mrb[7].mxu1  ;;  %1387 = vmatmul.mubr.msk.bf16.vlgmr.msra.gmra.mrb[16].mxu0 %vm752_vm2, %v706_v46  ;;  %v695_v56 = vmax.f32 %v651_v49, 0.0 }
 0x1d3   : > { %v646_v55 = vadd.f32 %v1230_v33, %v645_v54  ;;  %1403 = vmatpush3.bf16.msra.mxu0 %v1447_v32  ;;  %v693_v58 = vmax.f32 %v643_v51, 0.0 }
 0x1d4   : > { %v696_v57 = vmax.f32 %v654_v53, 0.0  ;;  %1404 = vmatprep.subr.bf16.mxu0 %v1448_v26 }
 0x1d5   : > { %v694_v59 = vmax.f32 %v646_v55, 0.0 }
 0x1d6   : > { %v708_v60 = vpack.c.bf16 %v696_v57, %v695_v56 }
 0x1d7   : > { %v707_v61 = vpack.c.bf16 %v694_v59, %v693_v58  ;;  %v1372_v62 = vpop.f32.mrb[8].mxu1  ;;  %1405 = vmatpush3.bf16.msra.mxu0 %v1448_v26 }
 0x1d8   : > { %v667_v63 = vadd.f32 %v1372_v62, %v1230_v33  ;;  %v658_v0 = vpop.f32.mrb[9].mxu1 }
 0x1d9   : > { %v659_v1 = vadd.f32 %v1230_v33, %v658_v0  ;;  %v1373_v2 = vpop.f32.mrb[10].mxu1  ;;  %1390 = vmatprep.mubr.msk.bf16.mxu0 %vm752_vm2, %v707_v61 }
 0x1da   : > { %v670_v3 = vadd.f32 %v1373_v2, %v1230_v33  ;;  %v661_v4 = vpop.f32.mrb[11].mxu1  ;;  %1391 = vmatmul.mubr.msk.bf16.gmra.mrb[20].mxu0 %vm752_vm2, %v708_v60  ;;  %v699_v6 = vmax.f32 %v667_v63, 0.0 }
 0x1db   : > { %v662_v5 = vadd.f32 %v1230_v33, %v661_v4  ;;  %v697_v8 = vmax.f32 %v659_v1, 0.0 }
 0x1dc   : > { %v700_v7 = vmax.f32 %v670_v3, 0.0 }
 0x1dd   : > { %v698_v9 = vmax.f32 %v662_v5, 0.0 }
 0x1de   : > { %v710_v10 = vpack.c.bf16 %v700_v7, %v699_v6 }
 0x1df   : > { %v709_v11 = vpack.c.bf16 %v698_v9, %v697_v8  ;;  %v1376_v12 = vpop.f32.mrb[12].mxu1 }
 0x1e0   : > { %v683_v13 = vadd.f32 %v1376_v12, %v1230_v33  ;;  %v674_v14 = vpop.f32.mrb[13].mxu1 }
 0x1e1   : > { %v675_v15 = vadd.f32 %v1230_v33, %v674_v14  ;;  %v1377_v16 = vpop.f32.mrb[14].mxu1  ;;  %1394 = vmatprep.mubr.msk.bf16.mxu0 %vm752_vm2, %v709_v11 }
 0x1e2   : > { %v686_v17 = vadd.f32 %v1377_v16, %v1230_v33  ;;  %v677_v18 = vpop.f32.mrb[15].mxu1  ;;  %1395 = vmatmul.mubr.msk.bf16.gmra.mrb[24].mxu0 %vm752_vm2, %v710_v10  ;;  %v703_v20 = vmax.f32 %v683_v13, 0.0 }
 0x1e3   : > { %v678_v19 = vadd.f32 %v1230_v33, %v677_v18  ;;  %v701_v22 = vmax.f32 %v675_v15, 0.0 }
 0x1e4   : > { %v704_v21 = vmax.f32 %v686_v17, 0.0 }
 0x1e5   : > { %v702_v23 = vmax.f32 %v678_v19, 0.0 }
 0x1e6   : > { %v712_v24 = vpack.c.bf16 %v704_v21, %v703_v20  ;;  %v1686_v20 = vld [vmem:[#allocation2] ss:$0 sm:$0xff] }
 0x1e7   : > { %v711_v25 = vpack.c.bf16 %v702_v23, %v701_v22 }
 0x1e9   : > { %1398 = vmatprep.mubr.msk.bf16.mxu0 %vm752_vm2, %v711_v25 }
 0x1ea   : > { %1399 = vmatmul.mubr.msk.bf16.gmra.mrb[28].mxu0 %vm752_vm2, %v712_v24 }
 0x2a5   : > { %v1388_v28 = vpop.f32.mrb[16].mxu0 }
 0x2a6   : > { %v820_v29 = vadd.f32 %v1388_v28, %v1239_v27  ;;  %v811_v30 = vpop.f32.mrb[17].mxu0 }
 0x2a7   : > { %v812_v31 = vadd.f32 %v1239_v27, %v811_v30  ;;  %v1389_v32 = vpop.f32.mrb[18].mxu0 }
 0x2a8   : > { %v823_v33 = vadd.f32 %v1389_v32, %v1239_v27  ;;  %v814_v34 = vpop.f32.mrb[19].mxu0  ;;  %v876_v36 = vmax.f32 %v820_v29, 0.0 }
 0x2a9   : > { %v815_v35 = vadd.f32 %v1239_v27, %v814_v34  ;;  %v874_v38 = vmax.f32 %v812_v31, 0.0 }
 0x2aa   : > { %v877_v37 = vmax.f32 %v823_v33, 0.0 }
 0x2ab   : > { %v875_v39 = vmax.f32 %v815_v35, 0.0 }
 0x2ac   : > { %v891_v40 = vpack.c.bf16 %v877_v37, %v876_v36 }
 0x2ad   : > { %v890_v41 = vpack.c.bf16 %v875_v39, %v874_v38  ;;  %v1392_v42 = vpop.f32.mrb[20].mxu0 }
 0x2ae   : > { %v836_v43 = vadd.f32 %v1392_v42, %v1239_v27  ;;  %v827_v44 = vpop.f32.mrb[21].mxu0 }
 0x2af   : > { %v828_v45 = vadd.f32 %v1239_v27, %v827_v44  ;;  %v1393_v46 = vpop.f32.mrb[22].mxu0  ;;  %1406 = vmatprep.mubr.msk.bf16.mxu0 %vm921_vm3, %v890_v41 }
 0x2b0   : > { %v839_v47 = vadd.f32 %v1393_v46, %v1239_v27  ;;  %v830_v48 = vpop.f32.mrb[23].mxu0  ;;  %1407 = vmatmul.mubr.msk.bf16.vlgmr.msra.gmra.mrb[32].mxu0 %vm921_vm3, %v891_v40  ;;  %v880_v50 = vmax.f32 %v836_v43, 0.0 }
 0x2b1   : > { %v831_v49 = vadd.f32 %v1239_v27, %v830_v48  ;;  %v878_v52 = vmax.f32 %v828_v45, 0.0 }
 0x2b2   : > { %v881_v51 = vmax.f32 %v839_v47, 0.0 }
 0x2b3   : > { %v879_v53 = vmax.f32 %v831_v49, 0.0 }
 0x2b4   : > { %v893_v54 = vpack.c.bf16 %v881_v51, %v880_v50 }
 0x2b5   : > { %v892_v55 = vpack.c.bf16 %v879_v53, %v878_v52  ;;  %v1396_v56 = vpop.f32.mrb[24].mxu0 }
 0x2b6   : > { %v852_v57 = vadd.f32 %v1396_v56, %v1239_v27  ;;  %v843_v58 = vpop.f32.mrb[25].mxu0 }
 0x2b7   : > { %v844_v59 = vadd.f32 %v1239_v27, %v843_v58  ;;  %v1397_v60 = vpop.f32.mrb[26].mxu0  ;;  %1410 = vmatprep.mubr.msk.bf16.mxu1 %vm921_vm3, %v892_v55 }
 0x2b8   : > { %v855_v61 = vadd.f32 %v1397_v60, %v1239_v27  ;;  %v846_v62 = vpop.f32.mrb[27].mxu0  ;;  %1411 = vmatmul.mubr.msk.bf16.vlgmr.msra.gmra.mrb[16].mxu1 %vm921_vm3, %v893_v54  ;;  %v884_v0 = vmax.f32 %v852_v57, 0.0 }
 0x2b9   : > { %v847_v63 = vadd.f32 %v1239_v27, %v846_v62  ;;  %v882_v2 = vmax.f32 %v844_v59, 0.0 }
 0x2ba   : > { %v885_v1 = vmax.f32 %v855_v61, 0.0 }
 0x2bb   : > { %v883_v3 = vmax.f32 %v847_v63, 0.0 }
 0x2bc   : > { %v895_v4 = vpack.c.bf16 %v885_v1, %v884_v0 }
 0x2bd   : > { %v894_v5 = vpack.c.bf16 %v883_v3, %v882_v2  ;;  %v1400_v6 = vpop.f32.mrb[28].mxu0 }
 0x2be   : > { %v868_v7 = vadd.f32 %v1400_v6, %v1239_v27  ;;  %v859_v8 = vpop.f32.mrb[29].mxu0 }
 0x2bf   : > { %v860_v9 = vadd.f32 %v1239_v27, %v859_v8  ;;  %v1401_v10 = vpop.f32.mrb[30].mxu0  ;;  %1414 = vmatprep.mubr.msk.bf16.mxu1 %vm921_vm3, %v894_v5 }
 0x2c0   : > { %v871_v11 = vadd.f32 %v1401_v10, %v1239_v27  ;;  %v862_v12 = vpop.f32.mrb[31].mxu0  ;;  %1415 = vmatmul.mubr.msk.bf16.gmra.mrb[20].mxu1 %vm921_vm3, %v895_v4  ;;  %v888_v14 = vmax.f32 %v868_v7, 0.0 }
 0x2c1   : > { %v863_v13 = vadd.f32 %v1239_v27, %v862_v12  ;;  %v886_v16 = vmax.f32 %v860_v9, 0.0 }
 0x2c2   : > { %v889_v15 = vmax.f32 %v871_v11, 0.0 }
 0x2c3   : > { %v887_v17 = vmax.f32 %v863_v13, 0.0 }
 0x2c4   : > { %v897_v18 = vpack.c.bf16 %v889_v15, %v888_v14 }
 0x2c5   : > { %v896_v19 = vpack.c.bf16 %v887_v17, %v886_v16 }
 0x2c7   : > { %1418 = vmatprep.mubr.msk.bf16.mxu1 %vm921_vm3, %v896_v19 }
 0x2c8   : > { %1419 = vmatmul.mubr.msk.bf16.gmra.mrb[24].mxu1 %vm921_vm3, %v897_v18 }
 0x383   : > { %v1408_v21 = vpop.f32.mrb[32].mxu0 }
 0x384   : > { %v989_v22 = vadd.f32 %v1408_v21, %v1686_v20  ;;  %v980_v23 = vpop.f32.mrb[33].mxu0 }
 0x385   : > { %v981_v24 = vadd.f32 %v1686_v20, %v980_v23  ;;  %v1409_v25 = vpop.f32.mrb[34].mxu0 }
 0x386   : > { %v1265_v26 = vmul.f32 -1.442695, %v989_v22  ;;  %v992_v27 = vadd.f32 %v1409_v25, %v1686_v20  ;;  %v983_v28 = vpop.f32.mrb[35].mxu0 }
 0x387   : > { %v1263_v29 = vmul.f32 -1.442695, %v981_v24  ;;  %v984_v30 = vadd.f32 %v1686_v20, %v983_v28 }
 0x388   : > { %1449 = vpow2.f32 %v1265_v26  ;;  %v1266_v31 = vmul.f32 -1.442695, %v992_v27 }
 0x389   : > { %1451 = vpow2.f32 %v1263_v29  ;;  %v1264_v32 = vmul.f32 -1.442695, %v984_v30 }
 0x38a   : > { %1453 = vpow2.f32 %v1266_v31 }
 0x38b   : > { %1455 = vpow2.f32 %v1264_v32  ;;  %v1412_v33 = vpop.f32.mrb[16].mxu1 }
 0x38c   : > { %v1005_v34 = vadd.f32 %v1412_v33, %v1686_v20  ;;  %v996_v35 = vpop.f32.mrb[17].mxu1 }
 0x38d   : > { %v997_v36 = vadd.f32 %v1686_v20, %v996_v35  ;;  %v1413_v37 = vpop.f32.mrb[18].mxu1 }
 0x38e   : > { %v1269_v38 = vmul.f32 -1.442695, %v1005_v34  ;;  %v1008_v39 = vadd.f32 %v1413_v37, %v1686_v20  ;;  %v999_v40 = vpop.f32.mrb[19].mxu1 }
 0x38f   : > { %v1267_v41 = vmul.f32 -1.442695, %v997_v36  ;;  %v1000_v42 = vadd.f32 %v1686_v20, %v999_v40 }
 0x390   : > { %1457 = vpow2.f32 %v1269_v38  ;;  %v1270_v43 = vmul.f32 -1.442695, %v1008_v39 }
 0x391   : > { %1459 = vpow2.f32 %v1267_v41  ;;  %v1268_v44 = vmul.f32 -1.442695, %v1000_v42 }
 0x392   : > { %v1450_v45 = vpop.eup %1449  ;;  %1461 = vpow2.f32 %v1270_v43 }
 0x393   : > { %v1452_v46 = vpop.eup %1451  ;;  %v1093_v47 = vadd.f32 1.0, %v1450_v45  ;;  %1463 = vpow2.f32 %v1268_v44  ;;  %v1416_v48 = vpop.f32.mrb[20].mxu1 }
 0x394   : > { %v1454_v49 = vpop.eup %1453  ;;  %v1091_v50 = vadd.f32 1.0, %v1452_v46  ;;  %v1021_v51 = vadd.f32 %v1416_v48, %v1686_v20  ;;  %v1012_v52 = vpop.f32.mrb[21].mxu1 }
 0x395   : > { %v1456_v53 = vpop.eup %1455  ;;  %1465 = vrcp.f32 %v1093_v47  ;;  %v1094_v54 = vadd.f32 1.0, %v1454_v49  ;;  %v1013_v55 = vadd.f32 %v1686_v20, %v1012_v52  ;;  %v1417_v56 = vpop.f32.mrb[22].mxu1 }
 0x396   : > { %1467 = vrcp.f32 %v1091_v50  ;;  %v1092_v57 = vadd.f32 1.0, %v1456_v53  ;;  %v1273_v58 = vmul.f32 -1.442695, %v1021_v51  ;;  %v1024_v59 = vadd.f32 %v1417_v56, %v1686_v20  ;;  %v1015_v60 = vpop.f32.mrb[23].mxu1 }
 0x397   : > { %1469 = vrcp.f32 %v1094_v54  ;;  %v1271_v61 = vmul.f32 -1.442695, %v1013_v55  ;;  %v1016_v62 = vadd.f32 %v1686_v20, %v1015_v60 }
 0x398   : > { %1471 = vrcp.f32 %v1092_v57  ;;  %v1274_v63 = vmul.f32 -1.442695, %v1024_v59 }
 0x399   : > { %1473 = vpow2.f32 %v1273_v58  ;;  %v1272_v0 = vmul.f32 -1.442695, %v1016_v62 }
 0x39a   : > { %v1458_v1 = vpop.eup %1457  ;;  %1475 = vpow2.f32 %v1271_v61 }
 0x39b   : > { %v1460_v2 = vpop.eup %1459  ;;  %v1097_v3 = vadd.f32 1.0, %v1458_v1  ;;  %1477 = vpow2.f32 %v1274_v63  ;;  %v1420_v4 = vpop.f32.mrb[24].mxu1 }
 0x39c   : > { %v1462_v5 = vpop.eup %1461  ;;  %v1095_v6 = vadd.f32 1.0, %v1460_v2  ;;  %1479 = vpow2.f32 %v1272_v0  ;;  %v1037_v7 = vadd.f32 %v1420_v4, %v1686_v20  ;;  %v1028_v8 = vpop.f32.mrb[25].mxu1 }
 0x39d   : > { %v1464_v9 = vpop.eup %1463  ;;  %1481 = vrcp.f32 %v1097_v3  ;;  %v1098_v10 = vadd.f32 1.0, %v1462_v5  ;;  %v1029_v11 = vadd.f32 %v1686_v20, %v1028_v8  ;;  %v1421_v12 = vpop.f32.mrb[26].mxu1 }
 0x39e   : > { %1483 = vrcp.f32 %v1095_v6  ;;  %v1096_v13 = vadd.f32 1.0, %v1464_v9  ;;  %v1277_v14 = vmul.f32 -1.442695, %v1037_v7  ;;  %v1040_v15 = vadd.f32 %v1421_v12, %v1686_v20  ;;  %v1031_v16 = vpop.f32.mrb[27].mxu1 }
 0x39f   : > { %v1466_v17 = vpop.eup %1465  ;;  %1485 = vrcp.f32 %v1098_v10  ;;  %v1275_v18 = vmul.f32 -1.442695, %v1029_v11  ;;  %v1032_v19 = vadd.f32 %v1686_v20, %v1031_v16 }
 0x3a0   : > { %v1468_v21 = vpop.eup %1467  ;;  %1142 = vst.msk [vmem:[%s1706_s16 + $0x10] sm:$0xff] %vm1139_vm4, %v1466_v17  ;;  %1487 = vrcp.f32 %v1096_v13  ;;  %v1278_v22 = vmul.f32 -1.442695, %v1040_v15 }
 0x3a1   : > { %v1470_v23 = vpop.eup %1469  ;;  %1140 = vst.msk [vmem:[%s1706_s16] sm:$0xff] %vm1139_vm4, %v1468_v21  ;;  %1489 = vpow2.f32 %v1277_v14  ;;  %v1276_v24 = vmul.f32 -1.442695, %v1032_v19 }
 0x3a2   : > { %v1472_v25 = vpop.eup %1471  ;;  %1143 = vst.msk [vmem:[%s1706_s16 + $0x18] sm:$0xff] %vm1139_vm4, %v1470_v23  ;;  %1491 = vpow2.f32 %v1275_v18 }
 0x3a3   : > { %v1474_v26 = vpop.eup %1473  ;;  %1141 = vst.msk [vmem:[%s1706_s16 + $0x8] sm:$0xff] %vm1139_vm4, %v1472_v25  ;;  %1493 = vpow2.f32 %v1278_v22 }
 0x3a4   : > { %v1476_v20 = vpop.eup %1475  ;;  %v1101_v27 = vadd.f32 1.0, %v1474_v26  ;;  %1495 = vpow2.f32 %v1276_v24 }
 0x3a5   : > { %v1478_v28 = vpop.eup %1477  ;;  %v1099_v29 = vadd.f32 1.0, %v1476_v20 }
 0x3a6   : > { %v1480_v30 = vpop.eup %1479  ;;  %1497 = vrcp.f32 %v1101_v27  ;;  %v1102_v31 = vadd.f32 1.0, %v1478_v28 }
 0x3a7   : > { %v1482_v32 = vpop.eup %1481  ;;  %1499 = vrcp.f32 %v1099_v29  ;;  %v1100_v33 = vadd.f32 1.0, %v1480_v30 }
 0x3a8   : > { %v1484_v34 = vpop.eup %1483  ;;  %1146 = vst.msk [vmem:[%s1706_s16 + $0x30] sm:$0xff] %vm1139_vm4, %v1482_v32  ;;  %1501 = vrcp.f32 %v1102_v31 }
 0x3a9   : > { %v1486_v35 = vpop.eup %1485  ;;  %1144 = vst.msk [vmem:[%s1706_s16 + $0x20] sm:$0xff] %vm1139_vm4, %v1484_v34  ;;  %1503 = vrcp.f32 %v1100_v33 }
 0x3aa   : > { %v1488_v36 = vpop.eup %1487  ;;  %1147 = vst.msk [vmem:[%s1706_s16 + $0x38] sm:$0xff] %vm1139_vm4, %v1486_v35 }
 0x3ab   : > { %v1490_v37 = vpop.eup %1489  ;;  %1145 = vst.msk [vmem:[%s1706_s16 + $0x28] sm:$0xff] %vm1139_vm4, %v1488_v36 }
 0x3ac   : > { %v1492_v38 = vpop.eup %1491  ;;  %v1105_v39 = vadd.f32 1.0, %v1490_v37 }
 0x3ad   : > { %v1494_v40 = vpop.eup %1493  ;;  %v1103_v41 = vadd.f32 1.0, %v1492_v38 }
 0x3ae   : > { %v1496_v42 = vpop.eup %1495  ;;  %1505 = vrcp.f32 %v1105_v39  ;;  %v1106_v43 = vadd.f32 1.0, %v1494_v40 }
 0x3af   : > { %1507 = vrcp.f32 %v1103_v41  ;;  %v1104_v44 = vadd.f32 1.0, %v1496_v42 }
 0x3b0   : > { %v1498_v45 = vpop.eup %1497  ;;  %1509 = vrcp.f32 %v1106_v43 }
 0x3b1   : > { %v1500_v46 = vpop.eup %1499  ;;  %1150 = vst.msk [vmem:[%s1706_s16 + $0x50] sm:$0xff] %vm1139_vm4, %v1498_v45  ;;  %1511 = vrcp.f32 %v1104_v44 }
 0x3b2   : > { %v1502_v47 = vpop.eup %1501  ;;  %1148 = vst.msk [vmem:[%s1706_s16 + $0x40] sm:$0xff] %vm1139_vm4, %v1500_v46 }
 0x3b3   : > { %v1504_v48 = vpop.eup %1503  ;;  %1151 = vst.msk [vmem:[%s1706_s16 + $0x58] sm:$0xff] %vm1139_vm4, %v1502_v47 }
 0x3b4   : > { %1149 = vst.msk [vmem:[%s1706_s16 + $0x48] sm:$0xff] %vm1139_vm4, %v1504_v48 }
 0x3b8   : > { %v1506_v49 = vpop.eup %1505 }
 0x3b9   : > { %v1508_v50 = vpop.eup %1507  ;;  %1154 = vst.msk [vmem:[%s1706_s16 + $0x70] sm:$0xff] %vm1139_vm4, %v1506_v49 }
 0x3ba   : > { %v1510_v51 = vpop.eup %1509  ;;  %1152 = vst.msk [vmem:[%s1706_s16 + $0x60] sm:$0xff] %vm1139_vm4, %v1508_v50 }
 0x3bb   : > { %v1512_v52 = vpop.eup %1511  ;;  %1155 = vst.msk [vmem:[%s1706_s16 + $0x78] sm:$0xff] %vm1139_vm4, %v1510_v51 }
 0x3bc   : > { %1153 = vst.msk [vmem:[%s1706_s16 + $0x68] sm:$0xff] %vm1139_vm4, %v1512_v52 }
 0x3bd PF: > { %s21_s11 = sadd.s32 1, %s1519_s11  }
 0x3be   : > { %p18_p4 = scmp.ge.s32.totalorder %s21_s11, 5  }
 0x3c0   :  { %20 = sbr.rel (!%p18_p4) target bundleno = 3 (0x3), region = 86 }

</bundles_post_ra>
